<compile_context>
chip_gen: v7x
topology: tpu7x:2x2x1
jax: 0.10.0
libtpu: 0.0.40
codegen_flags: <defaults>
</compile_context>

<pallas_src>
import functools

import jax
import jax.numpy as jnp
from jax.experimental import pallas as pl
from jax.experimental.pallas import tpu as pltpu


# ------------------------------- utilities ---------------------------------

def _round_up(x, m):
    return (x + m - 1) // m * m


def _vmem_budget_bytes(frac=0.75):
    """Generation-aware usable VMEM (headroom left for Mosaic internal scratch)."""
    try:
        cap = int(pltpu.get_tpu_info().vmem_capacity_bytes)
    except Exception:
        cap = 64 * 1024 * 1024          # conservative fallback (v7x per-TC size)
    return int(cap * frac)


# ------------------------------ Pallas kernel -------------------------------

def _fused_mlp_kernel(*refs, num_layers, n_real, f_in_real, eps):
    """refs = (x, [w,b,gamma,beta]*(L-1) + [w,b] last  (HBM, pl.ANY),
               o_ref,
               x_scratch, per-param VMEM buffers, DMA semaphores).

    The layer loop is unrolled in Python (traced once); `h` never leaves
    VMEM / vregs.  All parameter DMAs are issued up front and waited on just
    before the layer that needs them, overlapping weight loads with compute.
    """
    num_params = 4 * (num_layers - 1) + 2
    x_ref = refs[0]
    hbm_p = refs[1:1 + num_params]
    o_ref = refs[1 + num_params]
    x_scr = refs[2 + num_params]
    vmem_p = refs[3 + num_params:3 + 2 * num_params]
    sem = refs[3 + 2 * num_params]

    # ---- issue every parameter DMA immediately (prefetch) ----
    copies = []
    for i in range(num_params):
        cp = pltpu.make_async_copy(hbm_p[i], vmem_p[i], sem.at[i])
        cp.start()
        copies.append(cp)

    # ---- zero-pad x into a lane/sublane-dense VMEM slab (in-kernel) ----
    n_pad, f_in_pad = x_scr.shape
    if (n_pad, f_in_pad) == (n_real, f_in_real):
        h = x_ref[...]                                  # already aligned
    else:
        x_scr[...] = jnp.zeros_like(x_scr)
        x_scr[0:n_real, 0:f_in_real] = x_ref[...]
        h = x_scr[...]

    if num_layers > 1:
        need_mask = (n_pad != n_real)
        if need_mask:
            # Padded batch rows must not pollute the BatchNorm statistics.
            row_ids = jax.lax.broadcasted_iota(jnp.int32, (n_pad, 1), 0)
            mask = (row_ids < n_real).astype(jnp.float32)
        inv_n = jnp.float32(1.0 / n_real)

    idx = 0
    for _ in range(num_layers - 1):
        for j in range(4):
            copies[idx + j].wait()
        w_ref, b_ref, g_ref, be_ref = vmem_p[idx:idx + 4]
        idx += 4

        # Linear: bf16 (or f32) MXU matmul with f32 accumulation (+ bias).
        y = jnp.dot(h.astype(w_ref.dtype), w_ref[...],
                    preferred_element_type=jnp.float32) + b_ref[...]

        # BatchNorm1d (training mode): shifted one-pass stats in f32.
        ref_row = y[0:1, :]                 # first real row as per-column shift
        ys = y - ref_row
        ysm = ys * mask if need_mask else ys
        s = jnp.sum(ysm, axis=0, keepdims=True)
        ss = jnp.sum(ysm * ys, axis=0, keepdims=True)
        mean_s = s * inv_n
        var = jnp.maximum(ss * inv_n - mean_s * mean_s, 0.0)
        mean = ref_row + mean_s
        y = (y - mean) * jax.lax.rsqrt(var + eps)
        y = y * g_ref[...] + be_ref[...]

        # ReLU, then keep the activation in the matmul dtype between layers.
        h = jnp.maximum(y, 0.0).astype(w_ref.dtype)

    copies[idx].wait()
    copies[idx + 1].wait()
    w_ref, b_ref = vmem_p[idx:idx + 2]
    out = jnp.dot(h.astype(w_ref.dtype), w_ref[...],
                  preferred_element_type=jnp.float32) + b_ref[...]
    o_ref[...] = out.astype(o_ref.dtype)


# ------------------------------ param handling ------------------------------

def init_mlp_params(key, num_layers, input_size, hidden_size, output_size):
    """Deterministic init mimicking nn.Linear's U(-1/sqrt(fan_in), 1/sqrt(fan_in))."""
    if num_layers < 1:
        raise ValueError('number of layers should be positive!')

    def linear_params(key, fan_in, fan_out):
        kw, kb = jax.random.split(key)
        bound = 1.0 / jnp.sqrt(fan_in)
        # stored pre-transposed: (in, out) so the kernel computes x @ W + b
        w = jax.random.uniform(kw, (fan_in, fan_out), jnp.float32, -bound, bound)
        b = jax.random.uniform(kb, (1, fan_out), jnp.float32, -bound, bound)
        return w, b

    params = {'linears': [], 'bn_gamma': [], 'bn_beta': []}
    if num_layers == 1:
        key, sub = jax.random.split(key)
        params['linears'].append(linear_params(sub, input_size, output_size))
        return params

    dims = [input_size] + [hidden_size] * (num_layers - 1) + [output_size]
    for i in range(num_layers):
        key, sub = jax.random.split(key)
        params['linears'].append(linear_params(sub, dims[i], dims[i + 1]))
    for _ in range(num_layers - 1):
        params['bn_gamma'].append(jnp.ones((1, hidden_size), jnp.float32))
        params['bn_beta'].append(jnp.zeros((1, hidden_size), jnp.float32))
    return params


def pad_params(params, num_layers, matmul_dtype=jnp.bfloat16):
    """Pad every feature dim to a multiple of 128 (lane-dense) and flatten the
    layer parameters into the tuple layout expected by the fused kernel.

    Weights are cast to `matmul_dtype` (bf16 by default → native MXU inputs,
    half the weight HBM/VMEM bytes); biases/gamma/beta stay f32 since they are
    applied after the f32 accumulation.  Zero-padded weight rows/cols, biases
    and betas guarantee padded feature columns remain exactly zero.
    """
    def pad_linear(w, b):
        fi, fo = w.shape
        fip, fop = _round_up(fi, 128), _round_up(fo, 128)
        wp = jnp.zeros((fip, fop), matmul_dtype).at[:fi, :fo].set(
            w.astype(matmul_dtype))
        bp = jnp.zeros((1, fop), jnp.float32).at[:, :fo].set(b)
        return wp, bp

    flat = []
    for i in range(num_layers - 1):
        wp, bp = pad_linear(*params['linears'][i])
        fo = params['linears'][i][0].shape[1]
        fop = wp.shape[1]
        gp = jnp.ones((1, fop), jnp.float32).at[:, :fo].set(params['bn_gamma'][i])
        bep = jnp.zeros((1, fop), jnp.float32).at[:, :fo].set(params['bn_beta'][i])
        flat += [wp, bp, gp, bep]
    wp, bp = pad_linear(*params['linears'][-1])
    flat += [wp, bp]
    return tuple(flat)


# ------------------------------ forward wrapper -----------------------------

@functools.partial(jax.jit, static_argnames=("num_layers", "output_size", "eps"))
def mlp_forward(padded_params, x, num_layers, output_size, eps=1e-5):
    n, f_in = x.shape
    num_params = len(padded_params)
    w_itemsize = padded_params[0].dtype.itemsize
    # sublane packing: f32 -> 8 rows/vreg, bf16 -> 16, int8/fp8 -> 32
    sub = 8 * (4 // w_itemsize)
    n_pad = _round_up(max(n, sub), sub)
    f_in_pad = padded_params[0].shape[0]
    out_pad = padded_params[-2].shape[1]

    # --- static bookkeeping: weight shapes, cost & VMEM estimates ---
    w_shapes = []
    i = 0
    for _ in range(num_layers - 1):
        w_shapes.append(padded_params[i].shape)
        i += 4
    w_shapes.append(padded_params[i].shape)
    max_f = max([f_in_pad] + [s[1] for s in w_shapes])

    flops = sum(2 * n_pad * a * b for a, b in w_shapes)
    transcendentals = n_pad * sum(s[1] for s in w_shapes[:-1])   # rsqrt per BN elem
    param_bytes = sum(int(p.size) * p.dtype.itemsize for p in padded_params)
    bytes_accessed = n * f_in * 4 + param_bytes + n_pad * out_pad * 4

    vmem_estimate = (2 * n * f_in * 4                      # x (double-buffered)
                     + n_pad * f_in_pad * 4                # x scratch
                     + param_bytes                         # per-layer VMEM buffers
                     + 4 * n_pad * max_f * 4               # h/y/stat temporaries
                     + 2 * n_pad * out_pad * 4)            # output
    vmem_budget = _vmem_budget_bytes()
    if vmem_estimate > vmem_budget:
        # TODO(synk): switch to a batch-tiled grid with cross-tile BN stats
        # (parallel axis for the 2 v7x TensorCores) once activations outgrow VMEM.
        raise NotImplementedError("fused MLP kernel sized for VMEM-resident shapes")

    kernel = functools.partial(_fused_mlp_kernel, num_layers=num_layers,
                               n_real=n, f_in_real=f_in, eps=eps)

    in_specs = ([pl.BlockSpec(memory_space=pltpu.MemorySpace.VMEM)]     # x
                + [pl.BlockSpec(memory_space=pl.ANY)] * num_params)     # params stay in HBM

    scratch_shapes = ([pltpu.VMEM((n_pad, f_in_pad), jnp.float32)]      # padded x slab
                      + [pltpu.VMEM(p.shape, p.dtype) for p in padded_params]
                      + [pltpu.SemaphoreType.DMA((num_params,))])

    out = pl.pallas_call(
        kernel,
        out_shape=jax.ShapeDtypeStruct((n_pad, out_pad), jnp.float32),
        in_specs=in_specs,
        out_specs=pl.BlockSpec(memory_space=pltpu.MemorySpace.VMEM),
        scratch_shapes=scratch_shapes,
        compiler_params=pltpu.CompilerParams(vmem_limit_bytes=vmem_budget),
        cost_estimate=pl.CostEstimate(flops=flops,
                                      transcendentals=transcendentals,
                                      bytes_accessed=bytes_accessed),
    )(x, *padded_params)

    return out[:n, :output_size]


# ------------------------------ pure-JAX reference --------------------------

def mlp_reference(params, x, num_layers, eps=1e-5):
    """Matches PyTorch training-mode forward (biased batch variance)."""
    if num_layers == 1:
        w, b = params['linears'][0]
        return x @ w + b
    h = x
    for i in range(num_layers - 1):
        w, b = params['linears'][i]
        y = h @ w + b
        mean = jnp.mean(y, axis=0, keepdims=True)
        var = jnp.mean((y - mean) ** 2, axis=0, keepdims=True)
        y = (y - mean) / jnp.sqrt(var + eps)
        y = y * params['bn_gamma'][i] + params['bn_beta'][i]
        h = jnp.maximum(y, 0.0)
    w, b = params['linears'][-1]
    return h @ w + b


# --------------------------------- main --------------------------------------

if __name__ == "__main__":
    num_layers = 3
    batch = 8
    input_size = 16
    hidden_size = 32
    output_size = 8

    key = jax.random.PRNGKey(0)
    key, kx = jax.random.split(key)
    x = jax.random.normal(kx, (batch, input_size), jnp.float32)

    params = init_mlp_params(key, num_layers, input_size, hidden_size,
                             output_size)
    ref = mlp_reference(params, x, num_layers)

    # 1) default bf16 MXU inputs (loose tolerance vs. f32 reference — expected
    #    precision change, not a bug).
    padded_bf16 = pad_params(params, num_layers)                    # bf16 default
    out_bf16 = jax.block_until_ready(mlp_forward(padded_bf16, x, num_layers,
                                                 output_size))
    assert out_bf16.shape == (batch, output_size)
    assert jnp.allclose(out_bf16, ref, atol=2e-1, rtol=2e-1), \
        "mismatch (multi-layer, bf16)"

    # 2) f32 configuration: exact parity with the PyTorch reference.
    padded_f32 = pad_params(params, num_layers, matmul_dtype=jnp.float32)
    out_f32 = jax.block_until_ready(mlp_forward(padded_f32, x, num_layers,
                                                output_size))
    assert jnp.allclose(out_f32, ref, atol=1e-4, rtol=1e-4), \
        "mismatch (multi-layer, f32)"

    # 3) single-layer (pure Linear) path through the same fused kernel.
    key, k1 = jax.random.split(key)
    params1 = init_mlp_params(k1, 1, input_size, hidden_size, output_size)
    ref1 = mlp_reference(params1, x, 1)
    out1 = jax.block_until_ready(
        mlp_forward(pad_params(params1, 1), x, 1, output_size))
    assert out1.shape == (batch, output_size)
    assert jnp.allclose(out1, ref1, atol=5e-2, rtol=5e-2), "mismatch (1-layer)"

    print("KERNEL_OK")
</pallas_src>

<mosaic_0001>
module attributes {stable_mosaic.version = 11 : i64} {
  func.func @_fused_mlp_kernel(%arg0: memref<8x16xf32, #tpu.memory_space<vmem>>, %arg1: memref<128x128xbf16, #tpu.memory_space<any>>, %arg2: memref<1x128xf32, #tpu.memory_space<any>>, %arg3: memref<1x128xf32, #tpu.memory_space<any>>, %arg4: memref<1x128xf32, #tpu.memory_space<any>>, %arg5: memref<128x128xbf16, #tpu.memory_space<any>>, %arg6: memref<1x128xf32, #tpu.memory_space<any>>, %arg7: memref<1x128xf32, #tpu.memory_space<any>>, %arg8: memref<1x128xf32, #tpu.memory_space<any>>, %arg9: memref<128x128xbf16, #tpu.memory_space<any>>, %arg10: memref<1x128xf32, #tpu.memory_space<any>>, %arg11: memref<16x128xf32, #tpu.memory_space<vmem>>, %arg12: memref<16x128xf32, #tpu.memory_space<vmem>>, %arg13: memref<128x128xbf16, #tpu.memory_space<vmem>>, %arg14: memref<1x128xf32, #tpu.memory_space<vmem>>, %arg15: memref<1x128xf32, #tpu.memory_space<vmem>>, %arg16: memref<1x128xf32, #tpu.memory_space<vmem>>, %arg17: memref<128x128xbf16, #tpu.memory_space<vmem>>, %arg18: memref<1x128xf32, #tpu.memory_space<vmem>>, %arg19: memref<1x128xf32, #tpu.memory_space<vmem>>, %arg20: memref<1x128xf32, #tpu.memory_space<vmem>>, %arg21: memref<128x128xbf16, #tpu.memory_space<vmem>>, %arg22: memref<1x128xf32, #tpu.memory_space<vmem>>, %arg23: memref<10x!tpu.dma_semaphore, #tpu.memory_space<semaphore_mem>>) attributes {dimension_semantics = [], scalar_prefetch = 0 : i64, scratch_operands = 12 : i64, tpu.core_type = #tpu.core_type<tc>} {
    %c0_i32 = arith.constant 0 : i32
    %0 = tpu.memref_slice %arg23[%c0_i32] : memref<10x!tpu.dma_semaphore, #tpu.memory_space<semaphore_mem>> -> memref<1x!tpu.dma_semaphore, #tpu.memory_space<semaphore_mem>>
    %1 = tpu.memref_squeeze %0 : memref<1x!tpu.dma_semaphore, #tpu.memory_space<semaphore_mem>> -> memref<!tpu.dma_semaphore, #tpu.memory_space<semaphore_mem>>
    tpu.enqueue_dma source(%arg1 : memref<128x128xbf16, #tpu.memory_space<any>>) target(%arg13 : memref<128x128xbf16, #tpu.memory_space<vmem>>) target_semaphore(%1 : memref<!tpu.dma_semaphore, #tpu.memory_space<semaphore_mem>>)
    %c1_i32 = arith.constant 1 : i32
    %2 = tpu.memref_slice %arg23[%c1_i32] : memref<10x!tpu.dma_semaphore, #tpu.memory_space<semaphore_mem>> -> memref<1x!tpu.dma_semaphore, #tpu.memory_space<semaphore_mem>>
    %3 = tpu.memref_squeeze %2 : memref<1x!tpu.dma_semaphore, #tpu.memory_space<semaphore_mem>> -> memref<!tpu.dma_semaphore, #tpu.memory_space<semaphore_mem>>
    tpu.enqueue_dma source(%arg2 : memref<1x128xf32, #tpu.memory_space<any>>) target(%arg14 : memref<1x128xf32, #tpu.memory_space<vmem>>) target_semaphore(%3 : memref<!tpu.dma_semaphore, #tpu.memory_space<semaphore_mem>>)
    %c2_i32 = arith.constant 2 : i32
    %4 = tpu.memref_slice %arg23[%c2_i32] : memref<10x!tpu.dma_semaphore, #tpu.memory_space<semaphore_mem>> -> memref<1x!tpu.dma_semaphore, #tpu.memory_space<semaphore_mem>>
    %5 = tpu.memref_squeeze %4 : memref<1x!tpu.dma_semaphore, #tpu.memory_space<semaphore_mem>> -> memref<!tpu.dma_semaphore, #tpu.memory_space<semaphore_mem>>
    tpu.enqueue_dma source(%arg3 : memref<1x128xf32, #tpu.memory_space<any>>) target(%arg15 : memref<1x128xf32, #tpu.memory_space<vmem>>) target_semaphore(%5 : memref<!tpu.dma_semaphore, #tpu.memory_space<semaphore_mem>>)
    %c3_i32 = arith.constant 3 : i32
    %6 = tpu.memref_slice %arg23[%c3_i32] : memref<10x!tpu.dma_semaphore, #tpu.memory_space<semaphore_mem>> -> memref<1x!tpu.dma_semaphore, #tpu.memory_space<semaphore_mem>>
    %7 = tpu.memref_squeeze %6 : memref<1x!tpu.dma_semaphore, #tpu.memory_space<semaphore_mem>> -> memref<!tpu.dma_semaphore, #tpu.memory_space<semaphore_mem>>
    tpu.enqueue_dma source(%arg4 : memref<1x128xf32, #tpu.memory_space<any>>) target(%arg16 : memref<1x128xf32, #tpu.memory_space<vmem>>) target_semaphore(%7 : memref<!tpu.dma_semaphore, #tpu.memory_space<semaphore_mem>>)
    %c4_i32 = arith.constant 4 : i32
    %8 = tpu.memref_slice %arg23[%c4_i32] : memref<10x!tpu.dma_semaphore, #tpu.memory_space<semaphore_mem>> -> memref<1x!tpu.dma_semaphore, #tpu.memory_space<semaphore_mem>>
    %9 = tpu.memref_squeeze %8 : memref<1x!tpu.dma_semaphore, #tpu.memory_space<semaphore_mem>> -> memref<!tpu.dma_semaphore, #tpu.memory_space<semaphore_mem>>
    tpu.enqueue_dma source(%arg5 : memref<128x128xbf16, #tpu.memory_space<any>>) target(%arg17 : memref<128x128xbf16, #tpu.memory_space<vmem>>) target_semaphore(%9 : memref<!tpu.dma_semaphore, #tpu.memory_space<semaphore_mem>>)
    %c5_i32 = arith.constant 5 : i32
    %10 = tpu.memref_slice %arg23[%c5_i32] : memref<10x!tpu.dma_semaphore, #tpu.memory_space<semaphore_mem>> -> memref<1x!tpu.dma_semaphore, #tpu.memory_space<semaphore_mem>>
    %11 = tpu.memref_squeeze %10 : memref<1x!tpu.dma_semaphore, #tpu.memory_space<semaphore_mem>> -> memref<!tpu.dma_semaphore, #tpu.memory_space<semaphore_mem>>
    tpu.enqueue_dma source(%arg6 : memref<1x128xf32, #tpu.memory_space<any>>) target(%arg18 : memref<1x128xf32, #tpu.memory_space<vmem>>) target_semaphore(%11 : memref<!tpu.dma_semaphore, #tpu.memory_space<semaphore_mem>>)
    %c6_i32 = arith.constant 6 : i32
    %12 = tpu.memref_slice %arg23[%c6_i32] : memref<10x!tpu.dma_semaphore, #tpu.memory_space<semaphore_mem>> -> memref<1x!tpu.dma_semaphore, #tpu.memory_space<semaphore_mem>>
    %13 = tpu.memref_squeeze %12 : memref<1x!tpu.dma_semaphore, #tpu.memory_space<semaphore_mem>> -> memref<!tpu.dma_semaphore, #tpu.memory_space<semaphore_mem>>
    tpu.enqueue_dma source(%arg7 : memref<1x128xf32, #tpu.memory_space<any>>) target(%arg19 : memref<1x128xf32, #tpu.memory_space<vmem>>) target_semaphore(%13 : memref<!tpu.dma_semaphore, #tpu.memory_space<semaphore_mem>>)
    %c7_i32 = arith.constant 7 : i32
    %14 = tpu.memref_slice %arg23[%c7_i32] : memref<10x!tpu.dma_semaphore, #tpu.memory_space<semaphore_mem>> -> memref<1x!tpu.dma_semaphore, #tpu.memory_space<semaphore_mem>>
    %15 = tpu.memref_squeeze %14 : memref<1x!tpu.dma_semaphore, #tpu.memory_space<semaphore_mem>> -> memref<!tpu.dma_semaphore, #tpu.memory_space<semaphore_mem>>
    tpu.enqueue_dma source(%arg8 : memref<1x128xf32, #tpu.memory_space<any>>) target(%arg20 : memref<1x128xf32, #tpu.memory_space<vmem>>) target_semaphore(%15 : memref<!tpu.dma_semaphore, #tpu.memory_space<semaphore_mem>>)
    %c8_i32 = arith.constant 8 : i32
    %16 = tpu.memref_slice %arg23[%c8_i32] : memref<10x!tpu.dma_semaphore, #tpu.memory_space<semaphore_mem>> -> memref<1x!tpu.dma_semaphore, #tpu.memory_space<semaphore_mem>>
    %17 = tpu.memref_squeeze %16 : memref<1x!tpu.dma_semaphore, #tpu.memory_space<semaphore_mem>> -> memref<!tpu.dma_semaphore, #tpu.memory_space<semaphore_mem>>
    tpu.enqueue_dma source(%arg9 : memref<128x128xbf16, #tpu.memory_space<any>>) target(%arg21 : memref<128x128xbf16, #tpu.memory_space<vmem>>) target_semaphore(%17 : memref<!tpu.dma_semaphore, #tpu.memory_space<semaphore_mem>>)
    %c9_i32 = arith.constant 9 : i32
    %18 = tpu.memref_slice %arg23[%c9_i32] : memref<10x!tpu.dma_semaphore, #tpu.memory_space<semaphore_mem>> -> memref<1x!tpu.dma_semaphore, #tpu.memory_space<semaphore_mem>>
    %19 = tpu.memref_squeeze %18 : memref<1x!tpu.dma_semaphore, #tpu.memory_space<semaphore_mem>> -> memref<!tpu.dma_semaphore, #tpu.memory_space<semaphore_mem>>
    tpu.enqueue_dma source(%arg10 : memref<1x128xf32, #tpu.memory_space<any>>) target(%arg22 : memref<1x128xf32, #tpu.memory_space<vmem>>) target_semaphore(%19 : memref<!tpu.dma_semaphore, #tpu.memory_space<semaphore_mem>>)
    %cst = arith.constant 0.000000e+00 : f32
    %20 = vector.broadcast %cst : f32 to vector<16x128xf32>
    %c0 = arith.constant 0 : index
    %c0_0 = arith.constant 0 : index
    %21 = vector.load %arg12[%c0, %c0_0] : memref<16x128xf32, #tpu.memory_space<vmem>>, vector<16x128xf32>
    tpu.vector_store %arg12[%c0, %c0_0], %20 {strides = array<i32>} : memref<16x128xf32, #tpu.memory_space<vmem>>, vector<16x128xf32>,
    %c0_1 = arith.constant 0 : index
    %c0_2 = arith.constant 0 : index
    %22 = vector.load %arg0[%c0_1, %c0_2] : memref<8x16xf32, #tpu.memory_space<vmem>>, vector<8x16xf32>
    %c0_3 = arith.constant 0 : index
    %c0_4 = arith.constant 0 : index
    %23 = vector.load %arg12[%c0_3, %c0_4] : memref<16x128xf32, #tpu.memory_space<vmem>>, vector<8x16xf32>
    tpu.vector_store %arg12[%c0_3, %c0_4], %22 {strides = array<i32>} : memref<16x128xf32, #tpu.memory_space<vmem>>, vector<8x16xf32>,
    %c0_5 = arith.constant 0 : index
    %c0_6 = arith.constant 0 : index
    %24 = vector.load %arg12[%c0_5, %c0_6] : memref<16x128xf32, #tpu.memory_space<vmem>>, vector<16x128xf32>
    %25 = tpu.iota {dimensions = array<i32: 0>} : vector<16x1xi32>
    %c8_i32_7 = arith.constant 8 : i32
    %26 = vector.broadcast %c8_i32_7 : i32 to vector<16x1xi32>
    %27 = arith.cmpi slt, %25, %26 : vector<16x1xi32>
    %28 = arith.extui %27 : vector<16x1xi1> to vector<16x1xi32>
    %29 = arith.sitofp %28 : vector<16x1xi32> to vector<16x1xf32>
    %c0_i32_8 = arith.constant 0 : i32
    %30 = tpu.memref_slice %arg23[%c0_i32_8] : memref<10x!tpu.dma_semaphore, #tpu.memory_space<semaphore_mem>> -> memref<1x!tpu.dma_semaphore, #tpu.memory_space<semaphore_mem>>
    %31 = tpu.memref_squeeze %30 : memref<1x!tpu.dma_semaphore, #tpu.memory_space<semaphore_mem>> -> memref<!tpu.dma_semaphore, #tpu.memory_space<semaphore_mem>>
    tpu.wait_dma2 semaphore(%31 : memref<!tpu.dma_semaphore, #tpu.memory_space<semaphore_mem>>) src(%arg1 : memref<128x128xbf16, #tpu.memory_space<any>>) dst(%arg13 : memref<128x128xbf16, #tpu.memory_space<vmem>>)
    %c1_i32_9 = arith.constant 1 : i32
    %32 = tpu.memref_slice %arg23[%c1_i32_9] : memref<10x!tpu.dma_semaphore, #tpu.memory_space<semaphore_mem>> -> memref<1x!tpu.dma_semaphore, #tpu.memory_space<semaphore_mem>>
    %33 = tpu.memref_squeeze %32 : memref<1x!tpu.dma_semaphore, #tpu.memory_space<semaphore_mem>> -> memref<!tpu.dma_semaphore, #tpu.memory_space<semaphore_mem>>
    tpu.wait_dma2 semaphore(%33 : memref<!tpu.dma_semaphore, #tpu.memory_space<semaphore_mem>>) src(%arg2 : memref<1x128xf32, #tpu.memory_space<any>>) dst(%arg14 : memref<1x128xf32, #tpu.memory_space<vmem>>)
    %c2_i32_10 = arith.constant 2 : i32
    %34 = tpu.memref_slice %arg23[%c2_i32_10] : memref<10x!tpu.dma_semaphore, #tpu.memory_space<semaphore_mem>> -> memref<1x!tpu.dma_semaphore, #tpu.memory_space<semaphore_mem>>
    %35 = tpu.memref_squeeze %34 : memref<1x!tpu.dma_semaphore, #tpu.memory_space<semaphore_mem>> -> memref<!tpu.dma_semaphore, #tpu.memory_space<semaphore_mem>>
    tpu.wait_dma2 semaphore(%35 : memref<!tpu.dma_semaphore, #tpu.memory_space<semaphore_mem>>) src(%arg3 : memref<1x128xf32, #tpu.memory_space<any>>) dst(%arg15 : memref<1x128xf32, #tpu.memory_space<vmem>>)
    %c3_i32_11 = arith.constant 3 : i32
    %36 = tpu.memref_slice %arg23[%c3_i32_11] : memref<10x!tpu.dma_semaphore, #tpu.memory_space<semaphore_mem>> -> memref<1x!tpu.dma_semaphore, #tpu.memory_space<semaphore_mem>>
    %37 = tpu.memref_squeeze %36 : memref<1x!tpu.dma_semaphore, #tpu.memory_space<semaphore_mem>> -> memref<!tpu.dma_semaphore, #tpu.memory_space<semaphore_mem>>
    tpu.wait_dma2 semaphore(%37 : memref<!tpu.dma_semaphore, #tpu.memory_space<semaphore_mem>>) src(%arg4 : memref<1x128xf32, #tpu.memory_space<any>>) dst(%arg16 : memref<1x128xf32, #tpu.memory_space<vmem>>)
    %38 = arith.truncf %24 : vector<16x128xf32> to vector<16x128xbf16>
    %c0_12 = arith.constant 0 : index
    %c0_13 = arith.constant 0 : index
    %39 = vector.load %arg13[%c0_12, %c0_13] : memref<128x128xbf16, #tpu.memory_space<vmem>>, vector<128x128xbf16>
    %cst_14 = arith.constant dense<0.000000e+00> : vector<16x128xf32>
    %40 = tpu.matmul %38, %39, %cst_14 {dimension_numbers = #tpu.dot_dimension_numbers<[1], [0], [0], [1], [0, 0, 1, 1], [], []>} : vector<16x128xbf16>, vector<128x128xbf16>, vector<16x128xf32> -> vector<16x128xf32>
    %c0_15 = arith.constant 0 : index
    %c0_16 = arith.constant 0 : index
    %41 = vector.load %arg14[%c0_15, %c0_16] : memref<1x128xf32, #tpu.memory_space<vmem>>, vector<1x128xf32>
    %42 = vector.broadcast %41 : vector<1x128xf32> to vector<16x128xf32>
    %43 = arith.addf %40, %42 : vector<16x128xf32>
    %44 = vector.extract_strided_slice %43 {offsets = [0, 0], sizes = [1, 128], strides = [1, 1]} : vector<16x128xf32> to vector<1x128xf32>
    %45 = vector.broadcast %44 : vector<1x128xf32> to vector<16x128xf32>
    %46 = arith.subf %43, %45 : vector<16x128xf32>
    %47 = vector.broadcast %29 : vector<16x1xf32> to vector<16x128xf32>
    %48 = arith.mulf %46, %47 : vector<16x128xf32>
    %cst_17 = arith.constant dense<0.000000e+00> : vector<128xf32>
    %49 = vector.multi_reduction <add>, %48, %cst_17 [0] : vector<16x128xf32> to vector<128xf32>
    %50 = vector.shape_cast %49 : vector<128xf32> to vector<1x128xf32>
    %51 = arith.mulf %48, %46 : vector<16x128xf32>
    %cst_18 = arith.constant dense<0.000000e+00> : vector<128xf32>
    %52 = vector.multi_reduction <add>, %51, %cst_18 [0] : vector<16x128xf32> to vector<128xf32>
    %53 = vector.shape_cast %52 : vector<128xf32> to vector<1x128xf32>
    %cst_19 = arith.constant 1.250000e-01 : f32
    %54 = vector.broadcast %cst_19 : f32 to vector<1x128xf32>
    %55 = arith.mulf %50, %54 : vector<1x128xf32>
    %cst_20 = arith.constant 1.250000e-01 : f32
    %56 = vector.broadcast %cst_20 : f32 to vector<1x128xf32>
    %57 = arith.mulf %53, %56 : vector<1x128xf32>
    %58 = arith.mulf %55, %55 : vector<1x128xf32>
    %59 = arith.subf %57, %58 : vector<1x128xf32>
    %cst_21 = arith.constant 0.000000e+00 : f32
    %60 = vector.broadcast %cst_21 : f32 to vector<1x128xf32>
    %61 = arith.maximumf %59, %60 : vector<1x128xf32>
    %62 = arith.addf %44, %55 : vector<1x128xf32>
    %63 = vector.broadcast %62 : vector<1x128xf32> to vector<16x128xf32>
    %64 = arith.subf %43, %63 : vector<16x128xf32>
    %cst_22 = arith.constant 9.99999974E-6 : f32
    %65 = vector.broadcast %cst_22 : f32 to vector<1x128xf32>
    %66 = arith.addf %61, %65 : vector<1x128xf32>
    %67 = math.rsqrt %66 : vector<1x128xf32>
    %68 = vector.broadcast %67 : vector<1x128xf32> to vector<16x128xf32>
    %69 = arith.mulf %64, %68 : vector<16x128xf32>
    %c0_23 = arith.constant 0 : index
    %c0_24 = arith.constant 0 : index
    %70 = vector.load %arg15[%c0_23, %c0_24] : memref<1x128xf32, #tpu.memory_space<vmem>>, vector<1x128xf32>
    %71 = vector.broadcast %70 : vector<1x128xf32> to vector<16x128xf32>
    %72 = arith.mulf %69, %71 : vector<16x128xf32>
    %c0_25 = arith.constant 0 : index
    %c0_26 = arith.constant 0 : index
    %73 = vector.load %arg16[%c0_25, %c0_26] : memref<1x128xf32, #tpu.memory_space<vmem>>, vector<1x128xf32>
    %74 = vector.broadcast %73 : vector<1x128xf32> to vector<16x128xf32>
    %75 = arith.addf %72, %74 : vector<16x128xf32>
    %cst_27 = arith.constant 0.000000e+00 : f32
    %76 = vector.broadcast %cst_27 : f32 to vector<16x128xf32>
    %77 = arith.maximumf %75, %76 : vector<16x128xf32>
    %78 = arith.truncf %77 : vector<16x128xf32> to vector<16x128xbf16>
    %c4_i32_28 = arith.constant 4 : i32
    %79 = tpu.memref_slice %arg23[%c4_i32_28] : memref<10x!tpu.dma_semaphore, #tpu.memory_space<semaphore_mem>> -> memref<1x!tpu.dma_semaphore, #tpu.memory_space<semaphore_mem>>
    %80 = tpu.memref_squeeze %79 : memref<1x!tpu.dma_semaphore, #tpu.memory_space<semaphore_mem>> -> memref<!tpu.dma_semaphore, #tpu.memory_space<semaphore_mem>>
    tpu.wait_dma2 semaphore(%80 : memref<!tpu.dma_semaphore, #tpu.memory_space<semaphore_mem>>) src(%arg5 : memref<128x128xbf16, #tpu.memory_space<any>>) dst(%arg17 : memref<128x128xbf16, #tpu.memory_space<vmem>>)
    %c5_i32_29 = arith.constant 5 : i32
    %81 = tpu.memref_slice %arg23[%c5_i32_29] : memref<10x!tpu.dma_semaphore, #tpu.memory_space<semaphore_mem>> -> memref<1x!tpu.dma_semaphore, #tpu.memory_space<semaphore_mem>>
    %82 = tpu.memref_squeeze %81 : memref<1x!tpu.dma_semaphore, #tpu.memory_space<semaphore_mem>> -> memref<!tpu.dma_semaphore, #tpu.memory_space<semaphore_mem>>
    tpu.wait_dma2 semaphore(%82 : memref<!tpu.dma_semaphore, #tpu.memory_space<semaphore_mem>>) src(%arg6 : memref<1x128xf32, #tpu.memory_space<any>>) dst(%arg18 : memref<1x128xf32, #tpu.memory_space<vmem>>)
    %c6_i32_30 = arith.constant 6 : i32
    %83 = tpu.memref_slice %arg23[%c6_i32_30] : memref<10x!tpu.dma_semaphore, #tpu.memory_space<semaphore_mem>> -> memref<1x!tpu.dma_semaphore, #tpu.memory_space<semaphore_mem>>
    %84 = tpu.memref_squeeze %83 : memref<1x!tpu.dma_semaphore, #tpu.memory_space<semaphore_mem>> -> memref<!tpu.dma_semaphore, #tpu.memory_space<semaphore_mem>>
    tpu.wait_dma2 semaphore(%84 : memref<!tpu.dma_semaphore, #tpu.memory_space<semaphore_mem>>) src(%arg7 : memref<1x128xf32, #tpu.memory_space<any>>) dst(%arg19 : memref<1x128xf32, #tpu.memory_space<vmem>>)
    %c7_i32_31 = arith.constant 7 : i32
    %85 = tpu.memref_slice %arg23[%c7_i32_31] : memref<10x!tpu.dma_semaphore, #tpu.memory_space<semaphore_mem>> -> memref<1x!tpu.dma_semaphore, #tpu.memory_space<semaphore_mem>>
    %86 = tpu.memref_squeeze %85 : memref<1x!tpu.dma_semaphore, #tpu.memory_space<semaphore_mem>> -> memref<!tpu.dma_semaphore, #tpu.memory_space<semaphore_mem>>
    tpu.wait_dma2 semaphore(%86 : memref<!tpu.dma_semaphore, #tpu.memory_space<semaphore_mem>>) src(%arg8 : memref<1x128xf32, #tpu.memory_space<any>>) dst(%arg20 : memref<1x128xf32, #tpu.memory_space<vmem>>)
    %c0_32 = arith.constant 0 : index
    %c0_33 = arith.constant 0 : index
    %87 = vector.load %arg17[%c0_32, %c0_33] : memref<128x128xbf16, #tpu.memory_space<vmem>>, vector<128x128xbf16>
    %cst_34 = arith.constant dense<0.000000e+00> : vector<16x128xf32>
    %88 = tpu.matmul %78, %87, %cst_34 {dimension_numbers = #tpu.dot_dimension_numbers<[1], [0], [0], [1], [0, 0, 1, 1], [], []>} : vector<16x128xbf16>, vector<128x128xbf16>, vector<16x128xf32> -> vector<16x128xf32>
    %c0_35 = arith.constant 0 : index
    %c0_36 = arith.constant 0 : index
    %89 = vector.load %arg18[%c0_35, %c0_36] : memref<1x128xf32, #tpu.memory_space<vmem>>, vector<1x128xf32>
    %90 = vector.broadcast %89 : vector<1x128xf32> to vector<16x128xf32>
    %91 = arith.addf %88, %90 : vector<16x128xf32>
    %92 = vector.extract_strided_slice %91 {offsets = [0, 0], sizes = [1, 128], strides = [1, 1]} : vector<16x128xf32> to vector<1x128xf32>
    %93 = vector.broadcast %92 : vector<1x128xf32> to vector<16x128xf32>
    %94 = arith.subf %91, %93 : vector<16x128xf32>
    %95 = vector.broadcast %29 : vector<16x1xf32> to vector<16x128xf32>
    %96 = arith.mulf %94, %95 : vector<16x128xf32>
    %cst_37 = arith.constant dense<0.000000e+00> : vector<128xf32>
    %97 = vector.multi_reduction <add>, %96, %cst_37 [0] : vector<16x128xf32> to vector<128xf32>
    %98 = vector.shape_cast %97 : vector<128xf32> to vector<1x128xf32>
    %99 = arith.mulf %96, %94 : vector<16x128xf32>
    %cst_38 = arith.constant dense<0.000000e+00> : vector<128xf32>
    %100 = vector.multi_reduction <add>, %99, %cst_38 [0] : vector<16x128xf32> to vector<128xf32>
    %101 = vector.shape_cast %100 : vector<128xf32> to vector<1x128xf32>
    %cst_39 = arith.constant 1.250000e-01 : f32
    %102 = vector.broadcast %cst_39 : f32 to vector<1x128xf32>
    %103 = arith.mulf %98, %102 : vector<1x128xf32>
    %cst_40 = arith.constant 1.250000e-01 : f32
    %104 = vector.broadcast %cst_40 : f32 to vector<1x128xf32>
    %105 = arith.mulf %101, %104 : vector<1x128xf32>
    %106 = arith.mulf %103, %103 : vector<1x128xf32>
    %107 = arith.subf %105, %106 : vector<1x128xf32>
    %cst_41 = arith.constant 0.000000e+00 : f32
    %108 = vector.broadcast %cst_41 : f32 to vector<1x128xf32>
    %109 = arith.maximumf %107, %108 : vector<1x128xf32>
    %110 = arith.addf %92, %103 : vector<1x128xf32>
    %111 = vector.broadcast %110 : vector<1x128xf32> to vector<16x128xf32>
    %112 = arith.subf %91, %111 : vector<16x128xf32>
    %cst_42 = arith.constant 9.99999974E-6 : f32
    %113 = vector.broadcast %cst_42 : f32 to vector<1x128xf32>
    %114 = arith.addf %109, %113 : vector<1x128xf32>
    %115 = math.rsqrt %114 : vector<1x128xf32>
    %116 = vector.broadcast %115 : vector<1x128xf32> to vector<16x128xf32>
    %117 = arith.mulf %112, %116 : vector<16x128xf32>
    %c0_43 = arith.constant 0 : index
    %c0_44 = arith.constant 0 : index
    %118 = vector.load %arg19[%c0_43, %c0_44] : memref<1x128xf32, #tpu.memory_space<vmem>>, vector<1x128xf32>
    %119 = vector.broadcast %118 : vector<1x128xf32> to vector<16x128xf32>
    %120 = arith.mulf %117, %119 : vector<16x128xf32>
    %c0_45 = arith.constant 0 : index
    %c0_46 = arith.constant 0 : index
    %121 = vector.load %arg20[%c0_45, %c0_46] : memref<1x128xf32, #tpu.memory_space<vmem>>, vector<1x128xf32>
    %122 = vector.broadcast %121 : vector<1x128xf32> to vector<16x128xf32>
    %123 = arith.addf %120, %122 : vector<16x128xf32>
    %cst_47 = arith.constant 0.000000e+00 : f32
    %124 = vector.broadcast %cst_47 : f32 to vector<16x128xf32>
    %125 = arith.maximumf %123, %124 : vector<16x128xf32>
    %126 = arith.truncf %125 : vector<16x128xf32> to vector<16x128xbf16>
    %c8_i32_48 = arith.constant 8 : i32
    %127 = tpu.memref_slice %arg23[%c8_i32_48] : memref<10x!tpu.dma_semaphore, #tpu.memory_space<semaphore_mem>> -> memref<1x!tpu.dma_semaphore, #tpu.memory_space<semaphore_mem>>
    %128 = tpu.memref_squeeze %127 : memref<1x!tpu.dma_semaphore, #tpu.memory_space<semaphore_mem>> -> memref<!tpu.dma_semaphore, #tpu.memory_space<semaphore_mem>>
    tpu.wait_dma2 semaphore(%128 : memref<!tpu.dma_semaphore, #tpu.memory_space<semaphore_mem>>) src(%arg9 : memref<128x128xbf16, #tpu.memory_space<any>>) dst(%arg21 : memref<128x128xbf16, #tpu.memory_space<vmem>>)
    %c9_i32_49 = arith.constant 9 : i32
    %129 = tpu.memref_slice %arg23[%c9_i32_49] : memref<10x!tpu.dma_semaphore, #tpu.memory_space<semaphore_mem>> -> memref<1x!tpu.dma_semaphore, #tpu.memory_space<semaphore_mem>>
    %130 = tpu.memref_squeeze %129 : memref<1x!tpu.dma_semaphore, #tpu.memory_space<semaphore_mem>> -> memref<!tpu.dma_semaphore, #tpu.memory_space<semaphore_mem>>
    tpu.wait_dma2 semaphore(%130 : memref<!tpu.dma_semaphore, #tpu.memory_space<semaphore_mem>>) src(%arg10 : memref<1x128xf32, #tpu.memory_space<any>>) dst(%arg22 : memref<1x128xf32, #tpu.memory_space<vmem>>)
    %c0_50 = arith.constant 0 : index
    %c0_51 = arith.constant 0 : index
    %131 = vector.load %arg21[%c0_50, %c0_51] : memref<128x128xbf16, #tpu.memory_space<vmem>>, vector<128x128xbf16>
    %cst_52 = arith.constant dense<0.000000e+00> : vector<16x128xf32>
    %132 = tpu.matmul %126, %131, %cst_52 {dimension_numbers = #tpu.dot_dimension_numbers<[1], [0], [0], [1], [0, 0, 1, 1], [], []>} : vector<16x128xbf16>, vector<128x128xbf16>, vector<16x128xf32> -> vector<16x128xf32>
    %c0_53 = arith.constant 0 : index
    %c0_54 = arith.constant 0 : index
    %133 = vector.load %arg22[%c0_53, %c0_54] : memref<1x128xf32, #tpu.memory_space<vmem>>, vector<1x128xf32>
    %134 = vector.broadcast %133 : vector<1x128xf32> to vector<16x128xf32>
    %135 = arith.addf %132, %134 : vector<16x128xf32>
    %c0_55 = arith.constant 0 : index
    %c0_56 = arith.constant 0 : index
    %136 = vector.load %arg11[%c0_55, %c0_56] : memref<16x128xf32, #tpu.memory_space<vmem>>, vector<16x128xf32>
    tpu.vector_store %arg11[%c0_55, %c0_56], %135 {strides = array<i32>} : memref<16x128xf32, #tpu.memory_space<vmem>>, vector<16x128xf32>,
    return
  }
}

</mosaic_0001>

<bundles_post_ra>
// kernel: mlp_forward.1
= control target key start
LH: loop header
LB: loop body
LE: loop exit
PB: predicated region body
PF: predicated region fallthrough
CT: control target
= control target key end

     0   :  { %s1043_s17 = smov [#allocation3]   ;;  %s1212_s0 = inlined_call_operand.vmem [shape: f32[8,16], index: 0, kind: input, shape index: {}]   ;;  %s1213_s1 = inlined_call_operand.hbm [shape: bf16[128,128], index: 1, kind: input, shape index: {}]   ;;  %s1214_s3 = inlined_call_operand.vmem [shape: f32[1,128], index: 3, kind: input, shape index: {}]   ;;  %s1215_s4 = inlined_call_operand.vmem [shape: f32[1,128], index: 4, kind: input, shape index: {}]   ;;  %s1216_s5 = inlined_call_operand.hbm [shape: bf16[128,128], index: 5, kind: input, shape index: {}]   ;;  %s1217_s6 = inlined_call_operand.vmem [shape: f32[1,128], index: 6, kind: input, shape index: {}]   ;;  %s1218_s7 = inlined_call_operand.vmem [shape: f32[1,128], index: 7, kind: input, shape index: {}]   ;;  %s1219_s8 = inlined_call_operand.vmem [shape: f32[1,128], index: 8, kind: input, shape index: {}]   ;;  %s1220_s9 = inlined_call_operand.hbm [shape: bf16[128,128], index: 9, kind: input, shape index: {}]   ;;  %s1221_s10 = inlined_call_operand.vmem [shape: f32[1,128], index: 10, kind: input, shape index: {}]   ;;  %s1222_s11 = inlined_call_operand.vmem [shape: f32[16,128], index: 11, kind: output, shape index: {}]   ;;  %s1223_s2 = inlined_call_operand.vmem [shape: f32[1,128], index: 2, kind: input, shape index: {}]  }
   0x1   :  { %s26_s18 = sshll.u32 %s1043_s17, 4  ;;  %v48_v0 = vld [vmem:[%s1223_s2] sm:$0x1]  ;;  %s957_s23 = scalar_lea.hbm %s1213_s1, 1024  ;;  %s27_s18 = int_to_ptr.vmem [resolvable:$true] %s26_s18 }
   0x2   :  { %49 = vst [vmem:[#allocation4] sm:$0x1] %v48_v0  ;;  %p958_p0 = scmp.ne.s32.totalorder %s1213_s1, %s957_s23  ;;  %p961_p1 = scmp.lt.u32.totalorder %s957_s23, %s1213_s1 }
   0x4   :  { %p963_p2 = pnand %p961_p1, %p958_p0 }
   0x6   :  { %966 = shalt.err (!%p963_p2)  }
   0x7   :  { %s967_s28 = scalar_lea.vmem %s27_s18, 1024  ;;  %p972_p4 = scmp.lt.s32.totalorder %s27_s18, %s27_s18 }
   0x8   :  { %p968_p3 = scmp.ne.s32.totalorder %s27_s18, %s967_s28  ;;  %p973_p5 = scmp.lt.s32.totalorder %s967_s28, %s967_s28 }
   0xa   :  { %p974_p6 = por %p973_p5, %p972_p4 }
   0xc   :  { %p975_p7 = pnand %p974_p6, %p968_p3 }
   0xe   :  { %978 = shalt.err (!%p975_p7)  }
   0xf   :  { %29 = dma.hbm_to_vmem [thread:$0]  %s1213_s1, 1024, %s27_s18, [#allocation13] }
  0x10   :  { %74 = vsyncadd [#allocation13 + $0x1], 16  ;;  %v93_v1 = vld [vmem:[%s1214_s3] sm:$0x1] }
  0x11   :  { %94 = vst [vmem:[#allocation5] sm:$0x1] %v93_v1 }
  0x12   :  { %119 = vsyncadd [#allocation13 + $0x2], 16  ;;  %v138_v2 = vld [vmem:[%s1215_s4] sm:$0x1] }
  0x13   :  { %139 = vst [vmem:[#allocation6] sm:$0x1] %v138_v2 }
  0x14   :  { %164 = vsyncadd [#allocation13 + $0x3], 16  ;;  %v195_v3 = vld [vmem:[%s1217_s6] sm:$0x1]  ;;  %s1044_s17 = smov [#allocation7]   ;;  %s979_s3 = scalar_lea.hbm %s1216_s5, 1024 }
  0x15   :  { %s173_s19 = sshll.u32 %s1044_s17, 4  ;;  %196 = vst [vmem:[#allocation8] sm:$0x1] %v195_v3  ;;  %p980_p8 = scmp.ne.s32.totalorder %s1216_s5, %s979_s3  ;;  %s174_s19 = int_to_ptr.vmem [resolvable:$true] %s173_s19 }
  0x16   :  { %p983_p9 = scmp.lt.u32.totalorder %s979_s3, %s1216_s5 }
  0x18   :  { %p985_p10 = pnand %p983_p9, %p980_p8 }
  0x1a   :  { %988 = shalt.err (!%p985_p10)  }
  0x1b   :  { %s989_s23 = scalar_lea.vmem %s174_s19, 1024  ;;  %p994_p12 = scmp.lt.s32.totalorder %s174_s19, %s174_s19 }
  0x1c   :  { %p990_p11 = scmp.ne.s32.totalorder %s174_s19, %s989_s23  ;;  %p995_p13 = scmp.lt.s32.totalorder %s989_s23, %s989_s23 }
  0x1e   :  { %p996_p0 = por %p995_p13, %p994_p12 }
  0x20   :  { %p997_p1 = pnand %p996_p0, %p990_p11 }
  0x22   :  { %1000 = shalt.err (!%p997_p1)  }
  0x23   :  { %176 = dma.hbm_to_vmem [thread:$0]  %s1216_s5, 1024, %s174_s19, [#allocation13 + $0x4] }
  0x24   :  { %221 = vsyncadd [#allocation13 + $0x5], 16  ;;  %v240_v4 = vld [vmem:[%s1218_s7] sm:$0x1] }
  0x25   :  { %241 = vst [vmem:[#allocation9] sm:$0x1] %v240_v4 }
  0x26   :  { %266 = vsyncadd [#allocation13 + $0x6], 16  ;;  %v285_v5 = vld [vmem:[%s1219_s8] sm:$0x1] }
  0x27   :  { %286 = vst [vmem:[#allocation10] sm:$0x1] %v285_v5 }
  0x28   :  { %311 = vsyncadd [#allocation13 + $0x7], 16  ;;  %v342_v6 = vld [vmem:[%s1221_s10] sm:$0x1]  ;;  %s1045_s30 = smov [#allocation11]   ;;  %s1001_s7 = scalar_lea.hbm %s1220_s9, 1024 }
  0x29   :  { %s320_s12 = sshll.u32 %s1045_s30, 4  ;;  %343 = vst [vmem:[#allocation12] sm:$0x1] %v342_v6  ;;  %p1002_p2 = scmp.ne.s32.totalorder %s1220_s9, %s1001_s7  ;;  %s321_s12 = int_to_ptr.vmem [resolvable:$true] %s320_s12 }
  0x2a   :  { %p1005_p3 = scmp.lt.u32.totalorder %s1001_s7, %s1220_s9 }
  0x2c   :  { %p1007_p4 = pnand %p1005_p3, %p1002_p2 }
  0x2e   :  { %1010 = shalt.err (!%p1007_p4)  }
  0x2f   :  { %s1011_s17 = scalar_lea.vmem %s321_s12, 1024  ;;  %p1016_p6 = scmp.lt.s32.totalorder %s321_s12, %s321_s12 }
  0x30   :  { %p1012_p5 = scmp.ne.s32.totalorder %s321_s12, %s1011_s17  ;;  %p1017_p7 = scmp.lt.s32.totalorder %s1011_s17, %s1011_s17 }
  0x32   :  { %p1018_p8 = por %p1017_p7, %p1016_p6 }
  0x34   :  { %p1019_p9 = pnand %p1018_p8, %p1012_p5 }
  0x36   :  { %1022 = shalt.err (!%p1019_p9)  }
  0x37   :  { %323 = dma.hbm_to_vmem [thread:$0]  %s1220_s9, 1024, %s321_s12, [#allocation13 + $0x8] }
  0x38   :  { %368 = vsyncadd [#allocation13 + $0x9], 16  ;;  %v371_v7 = vld [vmem:[%s1212_s0] sm:$0xff]  ;;  %vm372_vm0 = vcmask 130048   ;;  %v1046_v8 = vmov 0.0  }
  0x39   :  { %369 = vst [vmem:[#allocation2] sm:$0xff] %v1046_v8 }
  0x3a   :  { %373 = vst.msk [vmem:[#allocation2] sm:$0xff] %vm372_vm0, %v371_v7 }
  0x41   :  { %v374_v9 = vld [vmem:[#allocation2] sm:$0xff] }
  0x42   :  { %1023 = dma.done.wait [#allocation13], 1024 }
  0x43   :  { %1024 = vsyncadd [#allocation13], 4294966272 }
  0x44   :  { %1025 = dma.done.wait [#allocation13 + $0x1], 16 }
  0x45   :  { %1026 = vsyncadd [#allocation13 + $0x1], 4294967280 }
  0x46   :  { %1027 = dma.done.wait [#allocation13 + $0x2], 16 }
  0x47   :  { %1028 = vsyncadd [#allocation13 + $0x2], 4294967280 }
  0x48   :  { %1029 = dma.done.wait [#allocation13 + $0x3], 16 }
  0x49   :  { %1030 = vsyncadd [#allocation13 + $0x3], 4294967280  ;;  %888 = vmatprep.subr.bf16.mxu0 %v1046_v8  ;;  %vm1047_vm1 = vmmov 0   ;;  %v397_v10 = vld [vmem:[#allocation3] sm:$0xff]  ;;  %v398_v11 = vld [vmem:[#allocation3 + $0x8] sm:$0xff]  ;;  %v396_v18 = vpack.c.bf16 %v1046_v8, %v374_v9  ;;  %v453_v19 = vlaneseq }
  0x4a   :  { %904 = vmatprep.mubr.msk.bf16.mxu0 %vm1047_vm1, %v1046_v8  ;;  %889 = vmatpush3.bf16.msra.mxu0 %v397_v10  ;;  %v399_v12 = vld [vmem:[#allocation3 + $0x10] sm:$0xff]  ;;  %v400_v13 = vld [vmem:[#allocation3 + $0x18] sm:$0xff]  ;;  %v401_v14 = vld [vmem:[#allocation3 + $0x20] sm:$0xff] }
  0x4b   :  { %890 = vmatprep.subr.bf16.mxu0 %v1046_v8  ;;  %v402_v15 = vld [vmem:[#allocation3 + $0x28] sm:$0xff]  ;;  %v403_v16 = vld [vmem:[#allocation3 + $0x30] sm:$0xff]  ;;  %v404_v17 = vld [vmem:[#allocation3 + $0x38] sm:$0xff]  ;;  %v454_v20 = vshrl.u32 %v453_v19, 7 }
  0x4c   :  { %v844_v21 = vld [vmem:[#allocation4] ss:$0 sm:$0xff]  ;;  %v845_v60 = vld [vmem:[#allocation5] ss:$0 sm:$0xff]  ;;  %v846_v63 = vld [vmem:[#allocation6] ss:$0 sm:$0xff] }
  0x4d   :  { %v1180_v22 = vsub.s32 0, %v454_v20 }
  0x4e   :  { %891 = vmatpush3.bf16.msra.mxu0 %v398_v11 }
  0x4f   :  { %892 = vmatprep.subr.bf16.mxu0 %v1046_v8 }
  0x52   :  { %893 = vmatpush3.bf16.msra.mxu0 %v399_v12 }
  0x53   :  { %894 = vmatprep.subr.bf16.mxu0 %v1046_v8 }
  0x56   :  { %895 = vmatpush3.bf16.msra.mxu0 %v400_v13 }
  0x57   :  { %896 = vmatprep.subr.bf16.mxu0 %v1046_v8 }
  0x5a   :  { %897 = vmatpush3.bf16.msra.mxu0 %v401_v14 }
  0x5b   :  { %898 = vmatprep.subr.bf16.mxu0 %v1046_v8 }
  0x5e   :  { %899 = vmatpush3.bf16.msra.mxu0 %v402_v15 }
  0x5f   :  { %900 = vmatprep.subr.bf16.mxu0 %v1046_v8 }
  0x62   :  { %901 = vmatpush3.bf16.msra.mxu0 %v403_v16 }
  0x63   :  { %902 = vmatprep.subr.bf16.mxu0 %v1046_v8 }
  0x66   :  { %903 = vmatpush3.bf16.msra.mxu0 %v404_v17 }
  0x69   :  { %905 = vmatmul.mubr.bf16.vlgmr.msra.gmra.mrb[0].mxu0 %v396_v18 }
 0x13c   :  { %v446_v23 = vpop.f32.mrb[0].mxu0 }
 0x13d   :  { %v447_v24 = vadd.f32 %v844_v21, %v446_v23  ;;  %v906_v25 = vpop.f32.mrb[1].mxu0 }
 0x13e   :  { %v449_v26 = vpop.f32.mrb[2].mxu0 }
 0x13f   :  { %v450_v27 = vadd.f32 %v844_v21, %v449_v26  ;;  %v456_v28 = vrot.slane %v447_v24, %v1180_v22  ;;  %v907_v29 = vpop.f32.mrb[3].mxu0 }
 0x141   :  { %v457_v30 = vsub.f32 %v447_v24, %v456_v28  ;;  %v458_v31 = vsub.f32 %v450_v27, %v456_v28 }
 0x143   :  { %v460_v32 = vmul.f32 0.0, %v458_v31  ;;  %v468_v34 = vmul.f32 %v457_v30, %v457_v30 }
 0x145   :  { %v461_v33 = vadd.f32 %v460_v32, %v457_v30  ;;  %v469_v35 = vmul.f32 %v460_v32, %v458_v31 }
 0x147   :  { %v462_v36 = vrot.slane %v461_v33, 4  ;;  %v470_v37 = vadd.f32 %v469_v35, %v468_v34 }
 0x149   :  { %v463_v38 = vadd.f32 %v462_v36, %v461_v33  ;;  %v471_v39 = vrot.slane %v470_v37, 4 }
 0x14b   :  { %v464_v40 = vrot.slane %v463_v38, 2  ;;  %v472_v41 = vadd.f32 %v471_v39, %v470_v37 }
 0x14d   :  { %v465_v42 = vadd.f32 %v464_v40, %v463_v38  ;;  %v473_v43 = vrot.slane %v472_v41, 2 }
 0x14f   :  { %v466_v44 = vrot.slane %v465_v42, 1  ;;  %v474_v45 = vadd.f32 %v473_v43, %v472_v41 }
 0x151   :  { %v467_v46 = vadd.f32 %v466_v44, %v465_v42  ;;  %v475_v47 = vrot.slane %v474_v45, 1 }
 0x153   :  { %v476_v48 = vadd.f32 %v475_v47, %v474_v45  ;;  %v477_v49 = vmul.f32 0.125, %v467_v46 }
 0x155   :  { %v478_v50 = vmul.f32 0.125, %v476_v48  ;;  %v479_v51 = vmul.f32 %v477_v49, %v477_v49  ;;  %v482_v52 = vadd.f32 %v477_v49, %v447_v24 }
 0x157   :  { %v480_v53 = vsub.f32 %v478_v50, %v479_v51  ;;  %v486_v54 = vrot.slane %v482_v52, %v1180_v22 }
 0x159   :  { %v481_v55 = vmax.f32 %v480_v53, 0.0  ;;  %v487_v56 = vsub.f32 %v447_v24, %v486_v54  ;;  %v488_v57 = vsub.f32 %v450_v27, %v486_v54 }
 0x15b   :  { %v489_v58 = vadd.f32 1e-05, %v481_v55 }
 0x15d   :  { %953 = vrsqrt.f32 %v489_v58 }
 0x167   :  { %v954_v59 = vpop.eup %953 }
 0x168   :  { %v491_v61 = vmul.f32 %v954_v59, %v487_v56  ;;  %v492_v62 = vmul.f32 %v954_v59, %v488_v57 }
 0x16a   :  { %v500_v0 = vmul.f32 %v845_v60, %v491_v61  ;;  %v501_v1 = vmul.f32 %v845_v60, %v492_v62 }
 0x16c   :  { %v509_v2 = vadd.f32 %v846_v63, %v500_v0  ;;  %v510_v3 = vadd.f32 %v846_v63, %v501_v1 }
 0x16e   :  { %v511_v4 = vmax.f32 %v509_v2, 0.0  ;;  %v512_v5 = vmax.f32 %v510_v3, 0.0 }
 0x170   :  { %v513_v6 = vpack.c.bf16 %v512_v5, %v511_v4 }
 0x171   :  { %1031 = dma.done.wait [#allocation13 + $0x4], 1024 }
 0x172   :  { %1032 = vsyncadd [#allocation13 + $0x4], 4294966272 }
 0x173   :  { %1033 = dma.done.wait [#allocation13 + $0x5], 16 }
 0x174   :  { %1034 = vsyncadd [#allocation13 + $0x5], 4294967280 }
 0x175   :  { %1035 = dma.done.wait [#allocation13 + $0x6], 16 }
 0x176   :  { %1036 = vsyncadd [#allocation13 + $0x6], 4294967280 }
 0x177   :  { %1037 = dma.done.wait [#allocation13 + $0x7], 16 }
 0x178   :  { %1038 = vsyncadd [#allocation13 + $0x7], 4294967280  ;;  %908 = vmatprep.subr.bf16.mxu1 %v1046_v8  ;;  %924 = vmatprep.mubr.msk.bf16.mxu1 %vm1047_vm1, %v1046_v8  ;;  %v522_v7 = vld [vmem:[#allocation7] sm:$0xff]  ;;  %v523_v9 = vld [vmem:[#allocation7 + $0x8] sm:$0xff] }
 0x179   :  { %909 = vmatpush3.bf16.msra.mxu1 %v522_v7  ;;  %v524_v10 = vld [vmem:[#allocation7 + $0x10] sm:$0xff]  ;;  %v525_v11 = vld [vmem:[#allocation7 + $0x18] sm:$0xff]  ;;  %v526_v12 = vld [vmem:[#allocation7 + $0x20] sm:$0xff] }
 0x17a   :  { %910 = vmatprep.subr.bf16.mxu1 %v1046_v8  ;;  %v527_v13 = vld [vmem:[#allocation7 + $0x28] sm:$0xff]  ;;  %v528_v14 = vld [vmem:[#allocation7 + $0x30] sm:$0xff]  ;;  %v529_v15 = vld [vmem:[#allocation7 + $0x38] sm:$0xff] }
 0x17b   :  { %v847_v16 = vld [vmem:[#allocation8] ss:$0 sm:$0xff]  ;;  %v848_v55 = vld [vmem:[#allocation9] ss:$0 sm:$0xff]  ;;  %v849_v58 = vld [vmem:[#allocation10] ss:$0 sm:$0xff] }
 0x17d   :  { %911 = vmatpush3.bf16.msra.mxu1 %v523_v9 }
 0x17e   :  { %912 = vmatprep.subr.bf16.mxu1 %v1046_v8 }
 0x181   :  { %913 = vmatpush3.bf16.msra.mxu1 %v524_v10 }
 0x182   :  { %914 = vmatprep.subr.bf16.mxu1 %v1046_v8 }
 0x185   :  { %915 = vmatpush3.bf16.msra.mxu1 %v525_v11 }
 0x186   :  { %916 = vmatprep.subr.bf16.mxu1 %v1046_v8 }
 0x189   :  { %917 = vmatpush3.bf16.msra.mxu1 %v526_v12 }
 0x18a   :  { %918 = vmatprep.subr.bf16.mxu1 %v1046_v8 }
 0x18d   :  { %919 = vmatpush3.bf16.msra.mxu1 %v527_v13 }
 0x18e   :  { %920 = vmatprep.subr.bf16.mxu1 %v1046_v8 }
 0x191   :  { %921 = vmatpush3.bf16.msra.mxu1 %v528_v14 }
 0x192   :  { %922 = vmatprep.subr.bf16.mxu1 %v1046_v8 }
 0x195   :  { %923 = vmatpush3.bf16.msra.mxu1 %v529_v15 }
 0x198   :  { %925 = vmatmul.mubr.bf16.vlgmr.msra.gmra.mrb[0].mxu1 %v513_v6 }
 0x26b   :  { %v571_v17 = vpop.f32.mrb[0].mxu1 }
 0x26c   :  { %v572_v18 = vadd.f32 %v847_v16, %v571_v17  ;;  %v926_v19 = vpop.f32.mrb[1].mxu1 }
 0x26d   :  { %v574_v20 = vpop.f32.mrb[2].mxu1 }
 0x26e   :  { %v575_v21 = vadd.f32 %v847_v16, %v574_v20  ;;  %v581_v23 = vrot.slane %v572_v18, %v1180_v22  ;;  %v927_v24 = vpop.f32.mrb[3].mxu1 }
 0x270   :  { %v582_v25 = vsub.f32 %v572_v18, %v581_v23  ;;  %v583_v26 = vsub.f32 %v575_v21, %v581_v23 }
 0x272   :  { %v585_v27 = vmul.f32 0.0, %v583_v26  ;;  %v593_v29 = vmul.f32 %v582_v25, %v582_v25 }
 0x274   :  { %v586_v28 = vadd.f32 %v585_v27, %v582_v25  ;;  %v594_v30 = vmul.f32 %v585_v27, %v583_v26 }
 0x276   :  { %v587_v31 = vrot.slane %v586_v28, 4  ;;  %v595_v32 = vadd.f32 %v594_v30, %v593_v29 }
 0x278   :  { %v588_v33 = vadd.f32 %v587_v31, %v586_v28  ;;  %v596_v34 = vrot.slane %v595_v32, 4 }
 0x27a   :  { %v589_v35 = vrot.slane %v588_v33, 2  ;;  %v597_v36 = vadd.f32 %v596_v34, %v595_v32 }
 0x27c   :  { %v590_v37 = vadd.f32 %v589_v35, %v588_v33  ;;  %v598_v38 = vrot.slane %v597_v36, 2 }
 0x27e   :  { %v591_v39 = vrot.slane %v590_v37, 1  ;;  %v599_v40 = vadd.f32 %v598_v38, %v597_v36 }
 0x280   :  { %v592_v41 = vadd.f32 %v591_v39, %v590_v37  ;;  %v600_v42 = vrot.slane %v599_v40, 1 }
 0x282   :  { %v601_v43 = vadd.f32 %v600_v42, %v599_v40  ;;  %v602_v44 = vmul.f32 0.125, %v592_v41 }
 0x284   :  { %v603_v45 = vmul.f32 0.125, %v601_v43  ;;  %v604_v46 = vmul.f32 %v602_v44, %v602_v44  ;;  %v607_v47 = vadd.f32 %v602_v44, %v572_v18 }
 0x286   :  { %v605_v48 = vsub.f32 %v603_v45, %v604_v46  ;;  %v611_v49 = vrot.slane %v607_v47, %v1180_v22 }
 0x288   :  { %v606_v50 = vmax.f32 %v605_v48, 0.0  ;;  %v612_v51 = vsub.f32 %v572_v18, %v611_v49  ;;  %v613_v52 = vsub.f32 %v575_v21, %v611_v49 }
 0x28a   :  { %v614_v53 = vadd.f32 1e-05, %v606_v50 }
 0x28c   :  { %955 = vrsqrt.f32 %v614_v53 }
 0x296   :  { %v956_v54 = vpop.eup %955 }
 0x297   :  { %v616_v56 = vmul.f32 %v956_v54, %v612_v51  ;;  %v617_v57 = vmul.f32 %v956_v54, %v613_v52 }
 0x299   :  { %v625_v59 = vmul.f32 %v848_v55, %v616_v56  ;;  %v626_v60 = vmul.f32 %v848_v55, %v617_v57 }
 0x29b   :  { %v634_v61 = vadd.f32 %v849_v58, %v625_v59  ;;  %v635_v62 = vadd.f32 %v849_v58, %v626_v60 }
 0x29d   :  { %v636_v63 = vmax.f32 %v634_v61, 0.0  ;;  %v637_v0 = vmax.f32 %v635_v62, 0.0 }
 0x29f   :  { %v638_v1 = vpack.c.bf16 %v637_v0, %v636_v63 }
 0x2a0   :  { %1039 = dma.done.wait [#allocation13 + $0x8], 1024 }
 0x2a1   :  { %1040 = vsyncadd [#allocation13 + $0x8], 4294966272 }
 0x2a2   :  { %1041 = dma.done.wait [#allocation13 + $0x9], 16 }
 0x2a3   :  { %1042 = vsyncadd [#allocation13 + $0x9], 4294967280  ;;  %928 = vmatprep.subr.bf16.mxu0 %v1046_v8  ;;  %944 = vmatprep.mubr.msk.bf16.mxu0 %vm1047_vm1, %v1046_v8  ;;  %v643_v22 = vld [vmem:[#allocation11] sm:$0xff]  ;;  %v644_v2 = vld [vmem:[#allocation11 + $0x8] sm:$0xff] }
 0x2a4   :  { %929 = vmatpush3.bf16.msra.mxu0 %v643_v22  ;;  %v645_v3 = vld [vmem:[#allocation11 + $0x10] sm:$0xff]  ;;  %v646_v4 = vld [vmem:[#allocation11 + $0x18] sm:$0xff]  ;;  %v647_v5 = vld [vmem:[#allocation11 + $0x20] sm:$0xff] }
 0x2a5   :  { %930 = vmatprep.subr.bf16.mxu0 %v1046_v8  ;;  %v648_v6 = vld [vmem:[#allocation11 + $0x28] sm:$0xff]  ;;  %v649_v7 = vld [vmem:[#allocation11 + $0x30] sm:$0xff]  ;;  %v650_v9 = vld [vmem:[#allocation11 + $0x38] sm:$0xff] }
 0x2a6   :  { %v850_v10 = vld [vmem:[#allocation12] ss:$0 sm:$0xff] }
 0x2a8   :  { %931 = vmatpush3.bf16.msra.mxu0 %v644_v2 }
 0x2a9   :  { %932 = vmatprep.subr.bf16.mxu0 %v1046_v8 }
 0x2ac   :  { %933 = vmatpush3.bf16.msra.mxu0 %v645_v3 }
 0x2ad   :  { %934 = vmatprep.subr.bf16.mxu0 %v1046_v8 }
 0x2b0   :  { %935 = vmatpush3.bf16.msra.mxu0 %v646_v4 }
 0x2b1   :  { %936 = vmatprep.subr.bf16.mxu0 %v1046_v8 }
 0x2b4   :  { %937 = vmatpush3.bf16.msra.mxu0 %v647_v5 }
 0x2b5   :  { %938 = vmatprep.subr.bf16.mxu0 %v1046_v8 }
 0x2b8   :  { %939 = vmatpush3.bf16.msra.mxu0 %v648_v6 }
 0x2b9   :  { %940 = vmatprep.subr.bf16.mxu0 %v1046_v8 }
 0x2bc   :  { %941 = vmatpush3.bf16.msra.mxu0 %v649_v7 }
 0x2bd   :  { %942 = vmatprep.subr.bf16.mxu0 %v1046_v8 }
 0x2c0   :  { %943 = vmatpush3.bf16.msra.mxu0 %v650_v9 }
 0x2c3   :  { %945 = vmatmul.mubr.bf16.vlgmr.msra.gmra.mrb[4].mxu0 %v638_v1 }
 0x396   :  { %v692_v11 = vpop.f32.mrb[4].mxu0 }
 0x397   :  { %v693_v12 = vadd.f32 %v850_v10, %v692_v11  ;;  %v946_v13 = vpop.f32.mrb[5].mxu0 }
 0x398   :  { %v695_v14 = vpop.f32.mrb[6].mxu0 }
 0x399   :  { %699 = vst [vmem:[%s1222_s11] sm:$0xff] %v693_v12  ;;  %v696_v15 = vadd.f32 %v850_v10, %v695_v14  ;;  %v947_v16 = vpop.f32.mrb[7].mxu0 }
 0x39b   :  { %700 = vst [vmem:[%s1222_s11 + $0x8] sm:$0xff] %v696_v15 }
 0x39c   :  { %705 = vsyncmov [#allocation13] }
 0x39f   :  { %s706_s21 = vpop.sfrf %705 }
 0x3a0   :  { %p851_p10 = scmp.ne.s32.totalorder %s706_s21, 0 }
 0x3a2   :  { %710 = shalt.err (%p851_p10)  }
 0x3a3   :  { %712 = vsyncmov [#allocation13 + $0x1] }
 0x3a6   :  { %s713_s22 = vpop.sfrf %712 }
 0x3a7   :  { %p852_p11 = scmp.ne.s32.totalorder %s713_s22, 0 }
 0x3a9   :  { %717 = shalt.err (%p852_p11)  }
 0x3aa   :  { %719 = vsyncmov [#allocation13 + $0x2] }
 0x3ad   :  { %s720_s4 = vpop.sfrf %719 }
 0x3ae   :  { %p853_p12 = scmp.ne.s32.totalorder %s720_s4, 0 }
 0x3b0   :  { %724 = shalt.err (%p853_p12)  }
 0x3b1   :  { %726 = vsyncmov [#allocation13 + $0x3] }
 0x3b4   :  { %s727_s23 = vpop.sfrf %726 }
 0x3b5   :  { %p854_p13 = scmp.ne.s32.totalorder %s727_s23, 0 }
 0x3b7   :  { %731 = shalt.err (%p854_p13)  }
 0x3b8   :  { %733 = vsyncmov [#allocation13 + $0x4] }
 0x3bb   :  { %s734_s6 = vpop.sfrf %733 }
 0x3bc   :  { %p855_p0 = scmp.ne.s32.totalorder %s734_s6, 0 }
 0x3be   :  { %738 = shalt.err (%p855_p0)  }
 0x3bf   :  { %740 = vsyncmov [#allocation13 + $0x5] }
 0x3c2   :  { %s741_s11 = vpop.sfrf %740 }
 0x3c3   :  { %p856_p1 = scmp.ne.s32.totalorder %s741_s11, 0 }
 0x3c5   :  { %745 = shalt.err (%p856_p1)  }
 0x3c6   :  { %747 = vsyncmov [#allocation13 + $0x6] }
 0x3c9   :  { %s748_s24 = vpop.sfrf %747 }
 0x3ca   :  { %p857_p2 = scmp.ne.s32.totalorder %s748_s24, 0 }
 0x3cc   :  { %752 = shalt.err (%p857_p2)  }
 0x3cd   :  { %754 = vsyncmov [#allocation13 + $0x7] }
 0x3d0   :  { %s755_s25 = vpop.sfrf %754 }
 0x3d1   :  { %p858_p3 = scmp.ne.s32.totalorder %s755_s25, 0 }
 0x3d3   :  { %759 = shalt.err (%p858_p3)  }
 0x3d4   :  { %761 = vsyncmov [#allocation13 + $0x8] }
 0x3d7   :  { %s762_s26 = vpop.sfrf %761 }
 0x3d8   :  { %p859_p4 = scmp.ne.s32.totalorder %s762_s26, 0 }
 0x3da   :  { %766 = shalt.err (%p859_p4)  }
 0x3db   :  { %768 = vsyncmov [#allocation13 + $0x9] }
 0x3de   :  { %s769_s27 = vpop.sfrf %768 }
 0x3df   :  { %p860_p5 = scmp.ne.s32.totalorder %s769_s27, 0 }
 0x3e1   :  { %773 = shalt.err (%p860_p5)  }

</bundles_post_ra>
